<compile_context>
chip_gen: v5e
topology: v5e:2x2
jax: 0.10.0
libtpu: 0.0.40
codegen_flags: <defaults>
</compile_context>

<pallas_src>
import jax
import jax.numpy as jnp
from jax.experimental import pallas as pl
from jax.experimental.pallas import tpu as pltpu


def _deep_indep_normal_kernel(x_ref, w1_ref, b1_ref,
                              wm_ref, bm_ref, wv_ref, bv_ref,
                              mean_ref, logvar_ref):
    # Backbone: (Bp, L) @ (L, H) + (1, H) -> ReLU.  Recomputed per D-tile on
    # purpose (trivial FLOPs) so the grid axis can be fully "parallel".
    x_bf = x_ref[...].astype(jnp.bfloat16)
    h = jnp.dot(x_bf, w1_ref[...], preferred_element_type=jnp.float32)
    h = jnp.maximum(h + b1_ref[...].astype(jnp.float32), 0.0)
    h_bf = h.astype(jnp.bfloat16)

    # mean_head on the current TN-wide tile of Wm: (Bp, H) @ (H, TN) + (1, TN)
    mean = jnp.dot(h_bf, wm_ref[...], preferred_element_type=jnp.float32)
    mean_ref[...] = (mean + bm_ref[...].astype(jnp.float32)).astype(mean_ref.dtype)

    # logvar_head on the current TN-wide tile of Wv.
    logvar = jnp.dot(h_bf, wv_ref[...], preferred_element_type=jnp.float32)
    logvar_ref[...] = (logvar + bv_ref[...].astype(jnp.float32)).astype(logvar_ref.dtype)


def _pick_tile(d, requested):
    """Largest lane-aligned (multiple-of-128) divisor of d that is <= requested.

    Falls back to a single full-width tile when d is not a multiple of 128
    (block == full array dim is always legal).
    """
    if d % 128 != 0:
        return d
    tn = min(requested, d)
    tn = (tn // 128) * 128
    tn = max(tn, 128)
    while d % tn != 0:
        tn -= 128
    return tn


def deep_indep_normal_forward(x, w1, b1, wm, bm, wv, bv, out_event_shape, *, tn=512):
    """Fused forward of _DeepIndepNormal.

    Returns (mean, logvar), each of shape (B, *out_event_shape) — exactly what
    _DeepIndepNormal.forward gives back (no softplus, no distribution object).
    """
    B, L = x.shape
    H = w1.shape[1]
    D = wm.shape[1]

    tn = _pick_tile(D, tn)
    n_tiles = D // tn

    # Pad batch up to the f32 sublane count (8) so output stores are unmasked.
    Bp = ((B + 7) // 8) * 8
    if Bp != B:
        x = jnp.pad(x, ((0, Bp - B), (0, 0)))

    flops = 2 * Bp * L * H * n_tiles + 2 * (2 * Bp * H * D)
    bytes_accessed = (
        Bp * L * 4                  # x (f32)
        + (L * H + H) * 2           # w1, b1 (bf16)
        + 2 * (H * D + D) * 2       # wm, bm, wv, bv (bf16)
        + 2 * Bp * D * 4            # mean, logvar outputs (f32)
    )

    mean_flat, logvar_flat = pl.pallas_call(
        _deep_indep_normal_kernel,
        out_shape=(
            jax.ShapeDtypeStruct((Bp, D), jnp.float32),
            jax.ShapeDtypeStruct((Bp, D), jnp.float32),
        ),
        grid_spec=pltpu.PrefetchScalarGridSpec(
            num_scalar_prefetch=0,
            grid=(n_tiles,),
            in_specs=[
                pl.BlockSpec((Bp, L), lambda j: (0, 0)),   # x (tiny, resident)
                pl.BlockSpec((L, H), lambda j: (0, 0)),    # w1 (tiny, resident)
                pl.BlockSpec((1, H), lambda j: (0, 0)),    # b1
                pl.BlockSpec((H, tn), lambda j: (0, j)),   # Wm tile (streamed)
                pl.BlockSpec((1, tn), lambda j: (0, j)),   # bm tile
                pl.BlockSpec((H, tn), lambda j: (0, j)),   # Wv tile (streamed)
                pl.BlockSpec((1, tn), lambda j: (0, j)),   # bv tile
            ],
            out_specs=[
                pl.BlockSpec((Bp, tn), lambda j: (0, j)),  # mean tile
                pl.BlockSpec((Bp, tn), lambda j: (0, j)),  # logvar tile
            ],
        ),
        compiler_params=pltpu.CompilerParams(
            dimension_semantics=("parallel",),             # split D-tiles across TCs (v7x)
        ),
        cost_estimate=pl.CostEstimate(
            flops=flops, transcendentals=0, bytes_accessed=bytes_accessed,
        ),
    )(x, w1, b1, wm, bm, wv, bv)

    mean = mean_flat[:B].reshape((B,) + tuple(out_event_shape))
    logvar = logvar_flat[:B].reshape((B,) + tuple(out_event_shape))
    return mean, logvar


if __name__ == "__main__":
    # Small shapes consistent with the module: latent x -> image-shaped
    # (mean, logvar) pair.
    B = 2            # batch
    LATENT = 8       # input feature dim of x
    HIDDEN = 32      # backbone hidden width
    C, IMG_H, IMG_W = 4, 16, 16
    D = C * IMG_H * IMG_W   # 1024 flat output features per head

    key = jax.random.PRNGKey(0)
    kx, kw1, kb1, kwm, kbm, kwv, kbv = jax.random.split(key, 7)

    # Deterministic synthetic parameters; weights/biases stored in bf16
    # (halves the dominant HBM stream), activations accumulate in f32.
    x = jax.random.normal(kx, (B, LATENT), dtype=jnp.float32)
    w1 = (jax.random.normal(kw1, (LATENT, HIDDEN), dtype=jnp.float32) * 0.1).astype(jnp.bfloat16)
    b1 = (jax.random.normal(kb1, (1, HIDDEN), dtype=jnp.float32) * 0.1).astype(jnp.bfloat16)
    wm = (jax.random.normal(kwm, (HIDDEN, D), dtype=jnp.float32) * 0.1).astype(jnp.bfloat16)
    bm = (jax.random.normal(kbm, (1, D), dtype=jnp.float32) * 0.1).astype(jnp.bfloat16)
    wv = (jax.random.normal(kwv, (HIDDEN, D), dtype=jnp.float32) * 0.1).astype(jnp.bfloat16)
    bv = (jax.random.normal(kbv, (1, D), dtype=jnp.float32) * 0.1).astype(jnp.bfloat16)

    mean, logvar = deep_indep_normal_forward(
        x, w1, b1, wm, bm, wv, bv, (C, IMG_H, IMG_W), tn=512)
    mean = jax.block_until_ready(mean)
    logvar = jax.block_until_ready(logvar)

    # Pure-JAX reference with identical dtype choices (bf16 operands, f32 acc).
    x_bf = x.astype(jnp.bfloat16)
    h_ref = jnp.maximum(
        jnp.dot(x_bf, w1, preferred_element_type=jnp.float32) + b1.astype(jnp.float32), 0.0)
    h_bf = h_ref.astype(jnp.bfloat16)
    mean_ref = (jnp.dot(h_bf, wm, preferred_element_type=jnp.float32)
                + bm.astype(jnp.float32)).reshape(B, C, IMG_H, IMG_W)
    logvar_ref = (jnp.dot(h_bf, wv, preferred_element_type=jnp.float32)
                  + bv.astype(jnp.float32)).reshape(B, C, IMG_H, IMG_W)

    assert mean.shape == (B, C, IMG_H, IMG_W)
    assert logvar.shape == (B, C, IMG_H, IMG_W)
    assert jnp.allclose(mean, mean_ref, atol=1e-2, rtol=1e-2)
    assert jnp.allclose(logvar, logvar_ref, atol=1e-2, rtol=1e-2)

    # NOTE: _DeepIndepNormal.predict would wrap these in
    # Normal(mean, softplus(logvar) + 1e-5).to_event(3); forward() returns the
    # raw (mean, logvar) pair, which is what this kernel computes.
    # TODO(synk): softplus/Normal distribution construction (predict()) is left
    # to the caller; forward() semantics end at (mean, logvar).
    print("KERNEL_OK")
</pallas_src>

<mosaic_0001>
module attributes {stable_mosaic.version = 11 : i64} {
  func.func @_deep_indep_normal_kernel(%arg0: i32, %arg1: memref<8x8xf32, #tpu.memory_space<vmem>>, %arg2: memref<8x32xbf16, #tpu.memory_space<vmem>>, %arg3: memref<1x32xbf16, #tpu.memory_space<vmem>>, %arg4: memref<32x512xbf16, #tpu.memory_space<vmem>>, %arg5: memref<1x512xbf16, #tpu.memory_space<vmem>>, %arg6: memref<32x512xbf16, #tpu.memory_space<vmem>>, %arg7: memref<1x512xbf16, #tpu.memory_space<vmem>>, %arg8: memref<8x512xf32, #tpu.memory_space<vmem>>, %arg9: memref<8x512xf32, #tpu.memory_space<vmem>>) attributes {dimension_semantics = [#tpu.dimension_semantics<parallel>], iteration_bounds = array<i64: 2>, scalar_prefetch = 0 : i64, scratch_operands = 0 : i64, tpu.core_type = #tpu.core_type<tc>, window_params = [{pipeline_mode = #tpu.pipeline_mode<synchronous>, transform_indices = @transform_0, window_bounds = array<i64: 8, 8>}, {pipeline_mode = #tpu.pipeline_mode<synchronous>, transform_indices = @transform_1, window_bounds = array<i64: 8, 32>}, {pipeline_mode = #tpu.pipeline_mode<synchronous>, transform_indices = @transform_2, window_bounds = array<i64: 1, 32>}, {transform_indices = @transform_3, window_bounds = array<i64: 32, 512>}, {transform_indices = @transform_4, window_bounds = array<i64: 1, 512>}, {transform_indices = @transform_5, window_bounds = array<i64: 32, 512>}, {transform_indices = @transform_6, window_bounds = array<i64: 1, 512>}, {transform_indices = @transform_7, window_bounds = array<i64: 8, 512>}, {transform_indices = @transform_8, window_bounds = array<i64: 8, 512>}]} {
    %c0 = arith.constant 0 : index
    %c0_0 = arith.constant 0 : index
    %0 = vector.load %arg1[%c0, %c0_0] : memref<8x8xf32, #tpu.memory_space<vmem>>, vector<8x8xf32>
    %1 = arith.truncf %0 : vector<8x8xf32> to vector<8x8xbf16>
    %c0_1 = arith.constant 0 : index
    %c0_2 = arith.constant 0 : index
    %2 = vector.load %arg2[%c0_1, %c0_2] : memref<8x32xbf16, #tpu.memory_space<vmem>>, vector<8x32xbf16>
    %cst = arith.constant dense<0.000000e+00> : vector<8x32xf32>
    %3 = tpu.matmul %1, %2, %cst {dimension_numbers = #tpu.dot_dimension_numbers<[1], [0], [0], [1], [0, 0, 1, 1], [], []>} : vector<8x8xbf16>, vector<8x32xbf16>, vector<8x32xf32> -> vector<8x32xf32>
    %c0_3 = arith.constant 0 : index
    %c0_4 = arith.constant 0 : index
    %4 = vector.load %arg3[%c0_3, %c0_4] : memref<1x32xbf16, #tpu.memory_space<vmem>>, vector<1x32xbf16>
    %5 = arith.extf %4 : vector<1x32xbf16> to vector<1x32xf32>
    %6 = vector.broadcast %5 : vector<1x32xf32> to vector<8x32xf32>
    %7 = arith.addf %3, %6 : vector<8x32xf32>
    %cst_5 = arith.constant 0.000000e+00 : f32
    %8 = vector.broadcast %cst_5 : f32 to vector<8x32xf32>
    %9 = arith.maximumf %7, %8 : vector<8x32xf32>
    %10 = arith.truncf %9 : vector<8x32xf32> to vector<8x32xbf16>
    %c0_6 = arith.constant 0 : index
    %c0_7 = arith.constant 0 : index
    %11 = vector.load %arg4[%c0_6, %c0_7] : memref<32x512xbf16, #tpu.memory_space<vmem>>, vector<32x512xbf16>
    %cst_8 = arith.constant dense<0.000000e+00> : vector<8x512xf32>
    %12 = tpu.matmul %10, %11, %cst_8 {dimension_numbers = #tpu.dot_dimension_numbers<[1], [0], [0], [1], [0, 0, 1, 1], [], []>} : vector<8x32xbf16>, vector<32x512xbf16>, vector<8x512xf32> -> vector<8x512xf32>
    %c0_9 = arith.constant 0 : index
    %c0_10 = arith.constant 0 : index
    %13 = vector.load %arg5[%c0_9, %c0_10] : memref<1x512xbf16, #tpu.memory_space<vmem>>, vector<1x512xbf16>
    %14 = arith.extf %13 : vector<1x512xbf16> to vector<1x512xf32>
    %15 = vector.broadcast %14 : vector<1x512xf32> to vector<8x512xf32>
    %16 = arith.addf %12, %15 : vector<8x512xf32>
    %c0_11 = arith.constant 0 : index
    %c0_12 = arith.constant 0 : index
    %17 = vector.load %arg8[%c0_11, %c0_12] : memref<8x512xf32, #tpu.memory_space<vmem>>, vector<8x512xf32>
    tpu.vector_store %arg8[%c0_11, %c0_12], %16 {strides = array<i32>} : memref<8x512xf32, #tpu.memory_space<vmem>>, vector<8x512xf32>,
    %c0_13 = arith.constant 0 : index
    %c0_14 = arith.constant 0 : index
    %18 = vector.load %arg6[%c0_13, %c0_14] : memref<32x512xbf16, #tpu.memory_space<vmem>>, vector<32x512xbf16>
    %cst_15 = arith.constant dense<0.000000e+00> : vector<8x512xf32>
    %19 = tpu.matmul %10, %18, %cst_15 {dimension_numbers = #tpu.dot_dimension_numbers<[1], [0], [0], [1], [0, 0, 1, 1], [], []>} : vector<8x32xbf16>, vector<32x512xbf16>, vector<8x512xf32> -> vector<8x512xf32>
    %c0_16 = arith.constant 0 : index
    %c0_17 = arith.constant 0 : index
    %20 = vector.load %arg7[%c0_16, %c0_17] : memref<1x512xbf16, #tpu.memory_space<vmem>>, vector<1x512xbf16>
    %21 = arith.extf %20 : vector<1x512xbf16> to vector<1x512xf32>
    %22 = vector.broadcast %21 : vector<1x512xf32> to vector<8x512xf32>
    %23 = arith.addf %19, %22 : vector<8x512xf32>
    %c0_18 = arith.constant 0 : index
    %c0_19 = arith.constant 0 : index
    %24 = vector.load %arg9[%c0_18, %c0_19] : memref<8x512xf32, #tpu.memory_space<vmem>>, vector<8x512xf32>
    tpu.vector_store %arg9[%c0_18, %c0_19], %23 {strides = array<i32>} : memref<8x512xf32, #tpu.memory_space<vmem>>, vector<8x512xf32>,
    return
  }
  func.func @transform_0(%arg0: i32) -> (i32, i32) {
    %c0_i32 = arith.constant 0 : i32
    %c0_i32_0 = arith.constant 0 : i32
    %c0_i32_1 = arith.constant 0 : i32
    return %c0_i32, %c0_i32_0 : i32, i32
  }
  func.func @transform_1(%arg0: i32) -> (i32, i32) {
    %c0_i32 = arith.constant 0 : i32
    %c0_i32_0 = arith.constant 0 : i32
    %c0_i32_1 = arith.constant 0 : i32
    return %c0_i32, %c0_i32_0 : i32, i32
  }
  func.func @transform_2(%arg0: i32) -> (i32, i32) {
    %c0_i32 = arith.constant 0 : i32
    %c0_i32_0 = arith.constant 0 : i32
    %c0_i32_1 = arith.constant 0 : i32
    return %c0_i32, %c0_i32_0 : i32, i32
  }
  func.func @transform_3(%arg0: i32) -> (i32, i32) {
    %c0_i32 = arith.constant 0 : i32
    %c0_i32_0 = arith.constant 0 : i32
    return %c0_i32, %arg0 : i32, i32
  }
  func.func @transform_4(%arg0: i32) -> (i32, i32) {
    %c0_i32 = arith.constant 0 : i32
    %c0_i32_0 = arith.constant 0 : i32
    return %c0_i32, %arg0 : i32, i32
  }
  func.func @transform_5(%arg0: i32) -> (i32, i32) {
    %c0_i32 = arith.constant 0 : i32
    %c0_i32_0 = arith.constant 0 : i32
    return %c0_i32, %arg0 : i32, i32
  }
  func.func @transform_6(%arg0: i32) -> (i32, i32) {
    %c0_i32 = arith.constant 0 : i32
    %c0_i32_0 = arith.constant 0 : i32
    return %c0_i32, %arg0 : i32, i32
  }
  func.func @transform_7(%arg0: i32) -> (i32, i32) {
    %c0_i32 = arith.constant 0 : i32
    %c0_i32_0 = arith.constant 0 : i32
    return %c0_i32, %arg0 : i32, i32
  }
  func.func @transform_8(%arg0: i32) -> (i32, i32) {
    %c0_i32 = arith.constant 0 : i32
    %c0_i32_0 = arith.constant 0 : i32
    return %c0_i32, %arg0 : i32, i32
  }
}

</mosaic_0001>

<bundles_post_ra>
// kernel: tpu_custom_call.1
= control target key start
LH: loop header
LB: loop body
LE: loop exit
PB: predicated region body
PF: predicated region fallthrough
CT: control target
= control target key end

     0   :  { %s1810_s0 = inlined_call_operand.hbm [shape: f32[8,8], index: 0, kind: input, shape index: {}]   ;;  %s1811_s1 = inlined_call_operand.hbm [shape: bf16[8,32], index: 1, kind: input, shape index: {}]   ;;  %s1812_s2 = inlined_call_operand.vmem [shape: bf16[1,32], index: 2, kind: input, shape index: {}]   ;;  %s1813_s3 = inlined_call_operand.hbm [shape: bf16[32,1024], index: 3, kind: input, shape index: {}]   ;;  %s1814_s4 = inlined_call_operand.hbm [shape: bf16[1,1024], index: 4, kind: input, shape index: {}]   ;;  %s1815_s5 = inlined_call_operand.hbm [shape: bf16[32,1024], index: 5, kind: input, shape index: {}]   ;;  %s1816_s6 = inlined_call_operand.hbm [shape: bf16[1,1024], index: 6, kind: input, shape index: {}]   ;;  %s1817_s7 = inlined_call_operand.hbm [shape: f32[8,1024], index: 7, kind: output, shape index: {0}]   ;;  %s1818_s8 = inlined_call_operand.hbm [shape: f32[8,1024], index: 8, kind: output, shape index: {1}]  }
   0x1   :  { %1832 = sst [smem:[#allocation24_spill]] %s1810_s0 }
   0x2   :  { %1833 = sst [smem:[#allocation25_spill]] %s1813_s3 }
   0x3   :  { %1834 = sst [smem:[#allocation26_spill]] %s1814_s4 }
   0x4   :  { %1835 = sst [smem:[#allocation27_spill]] %s1817_s7 }
   0x5   :  { %1836 = sst [smem:[#allocation28_spill]] %s1818_s8 }
   0x6   :  { %14 = vsyncpa [#allocation3], 0 }
   0x7   :  { %15 = vsyncpa [#allocation6], 0 }
   0x8   :  { %16 = vsyncpa [#allocation4], 0 }
   0x9   :  { %18 = vsyncpa [#allocation4 + $0x1], 0 }
   0xa   :  { %19 = vsyncpa [#allocation13], 0 }
   0xb   :  { %21 = vsyncpa [#allocation13 + $0x1], 0  ;;  %s1525_s27 = smov 0   ;;  %s1527_s28 = smov 0  }
   0xc   :  { %s1529_s29 = smov 0   ;;  %s1531_s30 = smov 0  }
   0xd LB: > { %1837 = sst [smem:[#allocation19_spill]] %s1461_s27  ;;  %s1546_s9 = sadd.s32 4294967295, %s1473_s30   ;;  %s1473_s30 = sphi %s1531_s30, %s1866_s30   ;;  %s1469_s29 = sphi %s1529_s29, %s1870_s29   ;;  %s1465_s28 = sphi %s1527_s28, %s1869_s28   ;;  %s1461_s27 = sphi %s1525_s27, %s1868_s27  }
   0xe   : > { %s972_s10 = sadd.s32 4294967294, %s1473_s30   ;;  %s1550_s11 = sadd.s32 1, %s1473_s30  }
   0xf   : > { %1838 = sst [smem:[#allocation20_spill]] %s1550_s11  ;;  %s97_s12 = sadd.s32 1, %s1469_s29 }
  0x10   : > { %s94_s13 = ssub.s32 %s1473_s30, %s1550_s11  ;;  %p104_p0 = scmp.ne.s32.totalorder %s1469_s29, %s1465_s28 }
  0x11   : > { %p95_p1 = scmp.eq.s32.totalorder %s94_s13, 0  ;;  %p105_p2 = scmp.eq.s32.totalorder %s1473_s30, 0 }
  0x12   : > { %p110_p3 = scmp.ne.s32.totalorder %s1465_s28, %s1461_s27  ;;  %p1823_p4 = scmp.eq.s32.totalorder %s1546_s9, 0 }
  0x13   : > { %s1562_s14 = scalar_select %p95_p1, %s1469_s29, %s97_s12  }
  0x14   : > { %p1564_p5 = por %p105_p2, %p104_p0  ;;  %p1570_p6 = por %p1823_p4, %p110_p3 }
  0x15   : > { %1839 = sst [smem:[#allocation21_spill]] %s1562_s14  ;;  %p212_p7 = scmp.eq.s32.totalorder %s1546_s9, 1 }
  0x16   : > { %p218_p8 = scmp.eq.s32.totalorder %s972_s10, 1  ;;  %p973_p9 = scmp.ge.s32.totalorder %s1473_s30, 1 }
  0x17   : > { %p251_p10 = scmp.lt.s32.totalorder %s1473_s30, 3  ;;  %p1577_p11 = por %p212_p7, %p104_p0 }
  0x18   : > { %p1581_p12 = por %p218_p8, %p110_p3  ;;  %s1847_s0 = sld [smem:[#allocation24_spill]] }
  0x19   : > { %s1842_s17 = scalar_select %p1577_p11, 1, 0 }
  0x1a   : > { %s1844_s18 = scalar_select %p1581_p12, 1, 0 }
  0x1b   : > { %1843 = sst [smem:[#allocation22_spill]] %s1842_s17  ;;  %p1585_p13 = pnand %p973_p9, %p251_p10 }
  0x1c   : > { %1845 = sst [smem:[#allocation23_spill]] %s1844_s18  ;;  %s1475_s23 = smov [#allocation2]  }
  0x1d   : > { %p1117_p0 = pneg %p1585_p13  ;;  %s265_s24 = sshll.u32 %s1475_s23, 4  ;;  %s266_s24 = int_to_ptr.vmem [resolvable:$true] %s265_s24 }
  0x1e   : > { %s263_s22 = sshll.u32 %s1847_s0, 4  ;;  %p1146_p3 = scmp.lt.s32.totalorder %s1473_s30, 2  ;;  %s264_s22 = int_to_ptr.hbm [resolvable:$true] %s263_s22 }
  0x1f   : > { %p1597_p2 = pnand %p1117_p0, %p1823_p4  ;;  %s291_s26 = sand.u32 1, %s1473_s30  }
  0x20   : > { %p1607_p7 = pnand %p1146_p3, %p1564_p5  ;;  %s1822_s12 = sand.u32 1, %s1469_s29  }
  0x21   : > { %1120 = dma.hbm_to_vmem [thread:$0]  (!%p1597_p2), %s264_s22, 128, %s266_s24, [#allocation3]  }
  0x22   : > { %s1614_s13 = sshll.u32 %s1822_s12, 6  ;;  %s1824_s20 = sshll.u32 %s1473_s30, 4 }
  0x23   : > { %s1850_s3 = sld [smem:[#allocation25_spill]]  ;;  %s295_s14 = scalar_lea.vmem [#allocation7], %s1614_s13 }
  0x24   : > { %s303_s22 = sshll.u32 %s295_s14, 4  ;;  %s1623_s24 = scalar_lea.sflag [#allocation3], %s291_s26  ;;  %s304_s22 = int_to_ptr.vmem [resolvable:$true] %s303_s22 }
  0x25   : > { %p1221_p8 = pneg %p1607_p7 }
  0x29   : > { %s300_s0 = scalar_lea.hbm %s1850_s3, %s1824_s20  ;;  %s1224_s23 = scalar_lea.hbm %s1850_s3, 128 }
  0x2a   : > { %s301_s15 = sshll.u32 %s300_s0, 4  ;;  %s302_s15 = int_to_ptr.hbm [resolvable:$true] %s301_s15 }
  0x2b   : > { %s1217_s11 = sshra.s32 %s302_s15, 4  ;;  %s1218_s11 = int_to_ptr.hbm [resolvable:$true] %s1217_s11 }
  0x2c   : > { %s1219_s18 = scalar_lea.hbm %s1218_s11, 64  ;;  %p1225_p0 = scmp.lt.s32.totalorder %s1218_s11, %s1850_s3 }
  0x2d   : > { %p1220_p5 = scmp.ne.s32.totalorder %s1218_s11, %s1219_s18  ;;  %p1226_p3 = scmp.lt.s32.totalorder %s1224_s23, %s1219_s18 }
  0x2f   : > { %p1222_p9 = pnand %p1221_p8, %p1220_p5  ;;  %p1227_p1 = por %p1226_p3, %p1225_p0 }
  0x31   : > { %p1223_p10 = pneg %p1222_p9 }
  0x33   : > { %p1228_p4 = pnand %p1227_p1, %p1223_p10 }
  0x35   : > { %1231 = shalt.err (!%p1228_p4)
}
  0x36   : > { %s1830_s26 = smov 512   ;;  %s1477_s20 = smov 256  }
  0x37   : > { %s1478_s27 = smov 16   ;;  %s1851_s12 = sand.u32 1, %s1469_s29  }
  0x38   : > { %1127 = dma.hbm_to_vmem [thread:$0]  (!%p1607_p7), %s302_s15, 1024, %s304_s22, %s1623_s24, %s1830_s26, %s1477_s20, %s1478_s27  }
  0x39   : > { %s1644_s11 = sshll.u32 %s1851_s12, 2  ;;  %s1831_s18 = sshll.u32 %s1473_s30, 2 }
  0x3a   : > { %s1852_s4 = sld [smem:[#allocation26_spill]]  ;;  %s317_s3 = scalar_lea.vmem [#allocation8], %s1644_s11 }
  0x3b   : > { %s325_s8 = sshll.u32 %s317_s3, 4  ;;  %s326_s8 = int_to_ptr.vmem [resolvable:$true] %s325_s8 }
  0x40   : > { %s321_s14 = scalar_lea.hbm %s1852_s4, %s1831_s18  ;;  %s1254_s12 = scalar_lea.hbm %s1852_s4, 8 }
  0x41   : > { %s323_s0 = sshll.u32 %s321_s14, 4  ;;  %s324_s0 = int_to_ptr.hbm [resolvable:$true] %s323_s0 }
  0x42   : > { %s1247_s17 = sshra.s32 %s324_s0, 4  ;;  %s1248_s17 = int_to_ptr.hbm [resolvable:$true] %s1247_s17 }
  0x43   : > { %s1249_s7 = scalar_lea.hbm %s1248_s17, 4  ;;  %p1255_p9 = scmp.lt.s32.totalorder %s1248_s17, %s1852_s4 }
  0x44   : > { %p1250_p4 = scmp.ne.s32.totalorder %s1248_s17, %s1249_s7  ;;  %p1256_p10 = scmp.lt.s32.totalorder %s1254_s12, %s1249_s7 }
  0x46   : > { %p1252_p1 = pnand %p1250_p4, %p1221_p8  ;;  %p1257_p0 = por %p1256_p10, %p1255_p9 }
  0x48   : > { %p1253_p5 = pneg %p1252_p1 }
  0x4a   : > { %p1258_p3 = pnand %p1257_p0, %p1253_p5 }
  0x4c   : > { %1261 = shalt.err (!%p1258_p3)
}
  0x4d   : > { %1130 = dma.hbm_to_vmem [thread:$0]  (!%p1607_p7), %s324_s0, 64, %s326_s8, %s1623_s24  }
  0x4e   : > { %s1853_s3 = sshll.u32 %s1473_s30, 4  ;;  %s336_s18 = scalar_lea.vmem [#allocation9], %s1614_s13 }
  0x4f   : > { %s341_s22 = scalar_lea.hbm %s1815_s5, %s1853_s3  ;;  %s344_s26 = sshll.u32 %s336_s18, 4  ;;  %s345_s26 = int_to_ptr.vmem [resolvable:$true] %s344_s26 }
  0x50   : > { %s342_s15 = sshll.u32 %s341_s22, 4  ;;  %s1284_s0 = scalar_lea.hbm %s1815_s5, 128  ;;  %s343_s15 = int_to_ptr.hbm [resolvable:$true] %s342_s15 }
  0x51   : > { %s1277_s7 = sshra.s32 %s343_s15, 4  ;;  %s1278_s7 = int_to_ptr.hbm [resolvable:$true] %s1277_s7 }
  0x52   : > { %s1279_s17 = scalar_lea.hbm %s1278_s7, 64  ;;  %p1285_p9 = scmp.lt.s32.totalorder %s1278_s7, %s1815_s5 }
  0x53   : > { %p1280_p4 = scmp.ne.s32.totalorder %s1278_s7, %s1279_s17  ;;  %p1286_p10 = scmp.lt.s32.totalorder %s1284_s0, %s1279_s17 }
  0x55   : > { %p1282_p1 = pnand %p1280_p4, %p1221_p8  ;;  %p1287_p0 = por %p1286_p10, %p1285_p9 }
  0x57   : > { %p1283_p5 = pneg %p1282_p1 }
  0x59   : > { %p1288_p3 = pnand %p1287_p0, %p1283_p5 }
  0x5b   : > { %1291 = shalt.err (!%p1288_p3)
}
  0x5c   : > { %s1854_s13 = smov 512   ;;  %s275_s14 = sshll.u32 %s1811_s1, 4  ;;  %s276_s14 = int_to_ptr.hbm [resolvable:$true] %s275_s14 }
  0x5d   : > { %1133 = dma.hbm_to_vmem [thread:$0]  (!%p1607_p7), %s343_s15, 1024, %s345_s26, %s1623_s24, %s1854_s13, %s1477_s20, %s1478_s27  }
  0x5e   : > { %s1479_s22 = smov [#allocation5]   ;;  %s1855_s17 = sshll.u32 %s1473_s30, 2 }
  0x5f   : > { %s277_s7 = sshll.u32 %s1479_s22, 4  ;;  %s362_s0 = scalar_lea.hbm %s1816_s6, %s1855_s17  ;;  %s278_s7 = int_to_ptr.vmem [resolvable:$true] %s277_s7 }
  0x60   : > { %1123 = dma.hbm_to_vmem [thread:$0]  (!%p1597_p2), %s276_s14, 64, %s278_s7, [#allocation6]  }
  0x61   : > { %s358_s21 = scalar_lea.vmem [#allocation10], %s1644_s11  ;;  %s364_s4 = sshll.u32 %s362_s0, 4  ;;  %s365_s4 = int_to_ptr.hbm [resolvable:$true] %s364_s4 }
  0x62   : > { %s366_s23 = sshll.u32 %s358_s21, 4  ;;  %s1337_s27 = sshra.s32 %s365_s4, 4  ;;  %s367_s23 = int_to_ptr.vmem [resolvable:$true] %s366_s23  ;;  %s1338_s27 = int_to_ptr.hbm [resolvable:$true] %s1337_s27 }
  0x63   : > { %s1339_s20 = scalar_lea.hbm %s1338_s27, 4  ;;  %s1344_s26 = scalar_lea.hbm %s1816_s6, 8 }
  0x64   : > { %p1340_p4 = scmp.ne.s32.totalorder %s1338_s27, %s1339_s20  ;;  %p1345_p2 = scmp.lt.s32.totalorder %s1338_s27, %s1816_s6 }
  0x65   : > { %p1346_p9 = scmp.lt.s32.totalorder %s1344_s26, %s1339_s20 }
  0x66   : > { %p1342_p1 = pnand %p1340_p4, %p1221_p8 }
  0x67   : > { %p1347_p10 = por %p1346_p9, %p1345_p2 }
  0x68   : > { %p1343_p5 = pneg %p1342_p1 }
  0x6a   : > { %p1348_p0 = pnand %p1347_p10, %p1343_p5 }
  0x6c   : > { %1351 = shalt.err (!%p1348_p0)
}
  0x6d   : > { %1136 = dma.hbm_to_vmem [thread:$0]  (!%p1607_p7), %s365_s4, 64, %s367_s23, %s1623_s24  }
  0x6e   : > { %375 = sbr.rel (%p1585_p13) target bundleno = 419 (0x1a3), region = 48  ;;  %p1856_p8 = scmp.eq.s32.totalorder (!%p1585_p13), %s1546_s9, 0 }
  0x73   : > { %1440 = dma.done.wait (%p1856_p8), [#allocation3], 128   ;;  %p1857_p3 = pmov %p1856_p8 }
  0x75   : > { %1442 = vsyncadd (%p1857_p3), [#allocation3], 4294967168  ;;  %p1858_p4 = pmov %p1857_p3 }
  0x76   : > { %p1859_p1 = pmov %p1857_p3 }
  0x77   : > { %1444 = dma.done.wait (%p1858_p4), [#allocation6], 64  }
  0x78   : > { %1446 = vsyncadd (%p1859_p1), [#allocation6], 4294967232  ;;  %s387_s10 = sand.u32 1, %s1546_s9   ;;  %s1721_s4 = sand.u32 1, %s1465_s28  }
  0x79   : > { %s990_s19 = sshll.u32 %s1721_s4, 6  ;;  %s388_s24 = scalar_lea.sflag [#allocation3], %s387_s10 }
  0x7a   : > { %s1726_s11 = scalar_lea.vmem [#allocation7], %s990_s19 }
  0x7b   : > { %1448 = dma.done.wait (%p1570_p6), %s388_s24, 2176  }
  0x7c   : > { %1450 = vsyncadd (%p1570_p6), %s388_s24, 4294965120  ;;  %vm492_vm0 = vcmask 1043456   ;;  %v484_v0 = vld [vmem:[#allocation5] sm:$0xf]  ;;  %v482_v1 = vld [vmem:[#allocation2] sm:$0xff]  ;;  %vm488_vm1 = vcmask 64512  }
  0x7d   : > { %v1084_v2 = vld [vmem:[%s1726_s11 + $0x2c] sm:$0xf]  ;;  %v494_v3 = vsel %vm492_vm0, %v484_v0, 0  ;;  %v483_v4 = vpack.c.bf16 %v482_v1, %v482_v1  ;;  %v1025_v5 = vld [vmem:[%s1726_s11 + $0x38] sm:$0xf0]  ;;  %s411_s16 = scalar_lea.vmem [#allocation9], %s990_s19 }
  0x7e   : > { %503 = vmatpush.bf16.msra.mxu0 %v494_v3  ;;  %v1028_v6 = vor.u32 %v1084_v2, %v1025_v5  ;;  %v1015_v7 = vld [vmem:[%s1726_s11 + $0x20] sm:$0xf]  ;;  %v1085_v8 = vld [vmem:[%s1726_s11 + $0x2c] sm:$0xf0]  ;;  %v1083_v9 = vld [vmem:[%s1726_s11 + $0x24] sm:$0xf] }
  0x7f   : > { %v1016_v10 = vor.u32 %v1085_v8, %v1015_v7  ;;  %v1017_v11 = vld [vmem:[%s1726_s11 + $0x30] sm:$0xf0]  ;;  %v1023_v12 = vld [vmem:[%s1726_s11 + $0x28] sm:$0xf]  ;;  %v1086_v13 = vld [vmem:[%s1726_s11 + $0x34] sm:$0xf0] }
  0x80   : > { %v1020_v14 = vor.u32 %v1083_v9, %v1017_v11  ;;  %v1024_v15 = vor.u32 %v1086_v13, %v1023_v12  ;;  %v999_v16 = vld [vmem:[%s1726_s11] sm:$0xf]  ;;  %v1081_v17 = vld [vmem:[%s1726_s11 + $0xc] sm:$0xf0]  ;;  %v1079_v18 = vld [vmem:[%s1726_s11 + $0x4] sm:$0xf] }
  0x81   : > { %996 = vmatmul.msk.bf16.vlgmr.msra.gmra.mxu0 %vm488_vm1, %v483_v4  ;;  %584 = vmatpush.bf16.msra.mxu1 %v1016_v10  ;;  %v1000_v19 = vor.u32 %v1081_v17, %v999_v16  ;;  %v1001_v20 = vld [vmem:[%s1726_s11 + $0x10] sm:$0xf0]  ;;  %v1007_v21 = vld [vmem:[%s1726_s11 + $0x8] sm:$0xf]  ;;  %v1082_v22 = vld [vmem:[%s1726_s11 + $0x14] sm:$0xf0] }
  0x82   : > { %623 = vmatpush.bf16.msrb.mxu0 %v1028_v6  ;;  %597 = vmatpush.bf16.msra.mxu2 %v1020_v14  ;;  %v1004_v23 = vor.u32 %v1079_v18, %v1001_v20  ;;  %v1008_v24 = vor.u32 %v1082_v22, %v1007_v21  ;;  %v1080_v25 = vld [vmem:[%s1726_s11 + $0xc] sm:$0xf]  ;;  %v1009_v26 = vld [vmem:[%s1726_s11 + $0x18] sm:$0xf0]  ;;  %v1059_v30 = vld [vmem:[%s411_s16 + $0x28] sm:$0xf] }
  0x83   : > { %610 = vmatpush.bf16.msra.mxu3 %v1024_v15  ;;  %v1012_v27 = vor.u32 %v1080_v25, %v1009_v26  ;;  %v1091_v28 = vld [vmem:[%s411_s16 + $0x24] sm:$0xf]  ;;  %v1053_v29 = vld [vmem:[%s411_s16 + $0x30] sm:$0xf0]  ;;  %v1094_v32 = vld [vmem:[%s411_s16 + $0x34] sm:$0xf0] }
  0x84   : > { %v1056_v31 = vor.u32 %v1091_v28, %v1053_v29  ;;  %v1051_v33 = vld [vmem:[%s411_s16 + $0x20] sm:$0xf]  ;;  %v1093_v34 = vld [vmem:[%s411_s16 + $0x2c] sm:$0xf0]  ;;  %v1060_v35 = vor.u32 %v1094_v32, %v1059_v30  ;;  %v1092_v37 = vld [vmem:[%s411_s16 + $0x2c] sm:$0xf] }
  0x85   : > { %585 = vmatpush.bf16.msra.mxu1 %v1000_v19  ;;  %v1052_v36 = vor.u32 %v1093_v34, %v1051_v33  ;;  %v1061_v38 = vld [vmem:[%s411_s16 + $0x38] sm:$0xf0]  ;;  %v1087_v39 = vld [vmem:[%s411_s16 + $0x4] sm:$0xf]  ;;  %v1037_v41 = vld [vmem:[%s411_s16 + $0x10] sm:$0xf0] }
  0x86   : > { %598 = vmatpush.bf16.msra.mxu2 %v1004_v23  ;;  %624 = vmatpush.bf16.msrb.mxu0 %v1012_v27  ;;  %v1064_v40 = vor.u32 %v1092_v37, %v1061_v38  ;;  %v1043_v42 = vld [vmem:[%s411_s16 + $0x8] sm:$0xf]  ;;  %v1090_v43 = vld [vmem:[%s411_s16 + $0x14] sm:$0xf0]  ;;  %v1040_v44 = vor.u32 %v1087_v39, %v1037_v41  ;;  %v1035_v46 = vld [vmem:[%s411_s16] sm:$0xf] }
  0x87   : > { %611 = vmatpush.bf16.msra.mxu3 %v1008_v24  ;;  %v1044_v45 = vor.u32 %v1090_v43, %v1043_v42  ;;  %v1089_v47 = vld [vmem:[%s411_s16 + $0xc] sm:$0xf0]  ;;  %v1088_v48 = vld [vmem:[%s411_s16 + $0xc] sm:$0xf]  ;;  %v1045_v50 = vld [vmem:[%s411_s16 + $0x18] sm:$0xf0] }
  0x88   : > { %v1036_v49 = vor.u32 %v1089_v47, %v1035_v46  ;;  %v1048_v51 = vor.u32 %v1088_v48, %v1045_v50  ;;  %v485_v52 = vld [vmem:[%s1812_s2] sm:$0x1]  ;;  %vm574_vm2 = vcmask 261120   ;;  %s991_s22 = sshll.u32 %s1721_s4, 2  ;;  %s994_s17 = sshll.u32 %s1721_s4, 5 }
  0x89   : > { %703 = vmatpush.bf16.msrb.mxu1 %v1052_v36  ;;  %v486_v53 = vunpack.c.l.bf16 %v485_v52  ;;  %s401_s7 = scalar_lea.vmem [#allocation8], %s991_s22  ;;  %s1095_s12 = sshll.u32 %s1546_s9, 5 }
  0x8a   : > { %716 = vmatpush.bf16.msrb.mxu2 %v1056_v31  ;;  %742 = vmatpush.bf16.msra.mxu0 %v1064_v40  ;;  %v519_v60 = vld [vmem:[%s401_s7] sm:$0xf]  ;;  %s421_s8 = scalar_lea.vmem [#allocation10], %s991_s22  ;;  %s1860_s23 = sld [smem:[#allocation27_spill]] }
  0x8b   : > { %729 = vmatpush.bf16.msrb.mxu3 %v1060_v35  ;;  %v487_v54 = vperm.slane %v486_v53, 0  ;;  %v520_v61 = vunpack.c.l.bf16 %v519_v60  ;;  %v642_v8 = vld [vmem:[%s421_s8] sm:$0xf]  ;;  %s467_s20 = scalar_lea.vmem [#allocation11], %s994_s17  ;;  %s754_s13 = scalar_lea.sflag [#allocation4], %s1721_s4 }
  0x8c   : > { %v643_v11 = vunpack.c.l.bf16 %v642_v8  ;;  %s772_s25 = sshll.u32 %s467_s20, 4  ;;  %s773_s25 = int_to_ptr.vmem [resolvable:$true] %s772_s25 }
  0x8d   : > { %704 = vmatpush.bf16.msrb.mxu1 %v1036_v49  ;;  %v522_v62 = vperm.slane %v520_v61, 0  ;;  %v525_v63 = vperm.slane %v520_v61, 6  ;;  %v523_v2 = vperm.slane %v520_v61, 2  ;;  %v524_v4 = vperm.slane %v520_v61, 4 }
  0x8e   : > { %717 = vmatpush.bf16.msrb.mxu2 %v1040_v44  ;;  %743 = vmatpush.bf16.msra.mxu0 %v1048_v51  ;;  %v645_v18 = vperm.slane %v643_v11, 0  ;;  %v648_v19 = vperm.slane %v643_v11, 6 }
  0x8f   : > { %730 = vmatpush.bf16.msrb.mxu3 %v1044_v45  ;;  %v530_v0 = vperm.slane %v522_v62, 0  ;;  %v533_v1 = vperm.slane %v525_v63, 0  ;;  %v531_v9 = vperm.slane %v523_v2, 0  ;;  %v532_v10 = vperm.slane %v524_v4, 0 }
  0x90   : > { %s770_s27 = scalar_lea.hbm %s1860_s23, %s1095_s12  ;;  %s1387_s11 = scalar_lea.hbm %s1860_s23, 64 }
  0x91   : > { %s774_s15 = sshll.u32 %s770_s27, 4  ;;  %s775_s15 = int_to_ptr.hbm [resolvable:$true] %s774_s15 }
  0x92   : > { %s1381_s18 = sshra.s32 %s775_s15, 4  ;;  %s1382_s18 = int_to_ptr.hbm [resolvable:$true] %s1381_s18 }
  0x93   : > { %s1383_s10 = scalar_lea.hbm %s1382_s18, 32  ;;  %p1388_p5 = scmp.lt.s32.totalorder %s1382_s18, %s1860_s23 }
  0x94   : > { %p1384_p6 = scmp.ne.s32.totalorder %s1382_s18, %s1383_s10  ;;  %p1389_p2 = scmp.lt.s32.totalorder %s1387_s11, %s1383_s10 }
  0x96   : > { %p1385_p13 = pnand %p1384_p6, %p1577_p11  ;;  %p1390_p9 = por %p1389_p2, %p1388_p5 }
  0x98   : > { %p1386_p7 = pneg %p1385_p13 }
  0x9a   : > { %p1391_p10 = pnand %p1390_p9, %p1386_p7 }
  0xfe   : > { %v505_v55 = vpop.f32.mrf.mxu0 }
  0xff   : > { %v506_v56 = vadd.f32 %v505_v55, %v487_v54 }
 0x101   : > { %v509_v57 = vmax.f32 %v506_v56, 0.0 }
 0x103   : > { %v510_v58 = vpack.c.bf16 %v509_v57, %v509_v57 }
 0x105   : > { %1029 = vmatmul.msk.bf16.vlgmr.msra.gmra.mxu1 %vm574_vm2, %v510_v58  ;;  %1030 = vmatmul.msk.bf16.vlgmr.msra.gmra.mxu2 %vm574_vm2, %v510_v58 }
 0x106   : > { %1031 = vmatmul.msk.bf16.vlgmr.msra.gmra.mxu3 %vm574_vm2, %v510_v58  ;;  %1032 = vmatmul.msk.bf16.vlgmr.msrb.gmra.mxu0 %vm574_vm2, %v510_v58  ;;  %v507_v59 = vpop.f32.mrf.mxu0 }
 0x115   : > { %1065 = vmatmul.msk.bf16.vlgmr.msrb.gmra.mxu1 %vm574_vm2, %v510_v58  ;;  %1066 = vmatmul.msk.bf16.vlgmr.msrb.gmra.mxu2 %vm574_vm2, %v510_v58 }
 0x116   : > { %1067 = vmatmul.msk.bf16.vlgmr.msrb.gmra.mxu3 %vm574_vm2, %v510_v58  ;;  %1068 = vmatmul.msk.bf16.vlgmr.msra.gmra.mxu0 %vm574_vm2, %v510_v58 }
 0x182   : > { %v587_v3 = vpop.f32.mrf.mxu1 }
 0x183   : > { %v588_v5 = vadd.f32 %v587_v3, %v530_v0  ;;  %v626_v6 = vpop.f32.mrf.mxu0 }
 0x184   : > { %v627_v7 = vadd.f32 %v626_v6, %v533_v1 }
 0x185   : > { %630 = vst [vmem:[%s467_s20] sm:$0xff] %v588_v5 }
 0x186   : > { %633 = vst [vmem:[%s467_s20 + $0x18] sm:$0xff] %v627_v7 }
 0x188   : > { %v600_v12 = vpop.f32.mrf.mxu2 }
 0x189   : > { %v601_v13 = vadd.f32 %v600_v12, %v531_v9  ;;  %v613_v14 = vpop.f32.mrf.mxu3 }
 0x18a   : > { %v614_v15 = vadd.f32 %v613_v14, %v532_v10  ;;  %v589_v16 = vpop.f32.mrf.mxu1 }
 0x18b   : > { %631 = vst [vmem:[%s467_s20 + $0x8] sm:$0xff] %v601_v13  ;;  %v628_v17 = vpop.f32.mrf.mxu0 }
 0x18c   : > { %632 = vst [vmem:[%s467_s20 + $0x10] sm:$0xff] %v614_v15 }
 0x18d   : > { %1394 = shalt.err (!%p1391_p10)
}
 0x18e   : > { %1113 = dma.vmem_to_hbm [thread:$0]  (%p1577_p11), %s773_s25, 512, %s775_s15, %s754_s13   ;;  %v653_v20 = vperm.slane %v645_v18, 0  ;;  %v656_v22 = vperm.slane %v648_v19, 0  ;;  %v646_v24 = vperm.slane %v643_v11, 2  ;;  %v647_v26 = vperm.slane %v643_v11, 4 }
 0x18f   : > { %s1862_s7 = sld [smem:[#allocation28_spill]]  ;;  %s474_s0 = scalar_lea.vmem [#allocation12], %s994_s17 }
 0x190   : > { %v602_v21 = vpop.f32.mrf.mxu2  ;;  %v654_v30 = vperm.slane %v646_v24, 0  ;;  %v655_v31 = vperm.slane %v647_v26, 0  ;;  %s787_s21 = sshll.u32 %s474_s0, 4  ;;  %s759_s9 = scalar_lea.sflag [#allocation13], %s1721_s4  ;;  %s788_s21 = int_to_ptr.vmem [resolvable:$true] %s787_s21 }
 0x191   : > { %v615_v23 = vpop.f32.mrf.mxu3 }
 0x192   : > { %v706_v25 = vpop.f32.mrf.mxu1 }
 0x193   : > { %v707_v27 = vadd.f32 %v706_v25, %v653_v20  ;;  %v745_v28 = vpop.f32.mrf.mxu0 }
 0x194   : > { %v746_v29 = vadd.f32 %v745_v28, %v656_v22 }
 0x195   : > { %s785_s8 = scalar_lea.hbm %s1862_s7, %s1095_s12  ;;  %749 = vst [vmem:[%s474_s0] sm:$0xff] %v707_v27  ;;  %s1415_s15 = scalar_lea.hbm %s1862_s7, 64 }
 0x196   : > { %752 = vst [vmem:[%s474_s0 + $0x18] sm:$0xff] %v746_v29  ;;  %s789_s27 = sshll.u32 %s785_s8, 4  ;;  %s790_s27 = int_to_ptr.hbm [resolvable:$true] %s789_s27 }
 0x197   : > { %s1409_s17 = sshra.s32 %s790_s27, 4  ;;  %s1410_s17 = int_to_ptr.hbm [resolvable:$true] %s1409_s17 }
 0x198   : > { %v719_v32 = vpop.f32.mrf.mxu2  ;;  %s1411_s12 = scalar_lea.hbm %s1410_s17, 32  ;;  %p1416_p4 = scmp.lt.s32.totalorder %s1410_s17, %s1862_s7 }
 0x199   : > { %v720_v33 = vadd.f32 %v719_v32, %v654_v30  ;;  %v732_v34 = vpop.f32.mrf.mxu3  ;;  %p1412_p0 = scmp.ne.s32.totalorder %s1410_s17, %s1411_s12  ;;  %p1417_p1 = scmp.lt.s32.totalorder %s1415_s15, %s1411_s12 }
 0x19a   : > { %v733_v35 = vadd.f32 %v732_v34, %v655_v31  ;;  %v708_v36 = vpop.f32.mrf.mxu1 }
 0x19b   : > { %750 = vst [vmem:[%s474_s0 + $0x8] sm:$0xff] %v720_v33  ;;  %v747_v37 = vpop.f32.mrf.mxu0  ;;  %p1413_p8 = pnand %p1412_p0, %p1577_p11  ;;  %p1418_p6 = por %p1417_p1, %p1416_p4 }
 0x19c   : > { %751 = vst [vmem:[%s474_s0 + $0x10] sm:$0xff] %v733_v35 }
 0x19d   : > { %p1414_p3 = pneg %p1413_p8 }
 0x19f   : > { %p1419_p13 = pnand %p1418_p6, %p1414_p3 }
 0x1a1   : > { %1422 = shalt.err (!%p1419_p13)
}
 0x1a2   : > { %1114 = dma.vmem_to_hbm [thread:$0]  (%p1577_p11), %s788_s21, 512, %s790_s27, %s759_s9   ;;  %v721_v38 = vpop.f32.mrf.mxu2  ;;  %v734_v39 = vpop.f32.mrf.mxu3 }
 0x1a3 PF: > { %s1863_s4 = sld [smem:[#allocation19_spill]]  ;;  %p1865_p7 = scmp.ge.s32.totalorder %s1473_s30, 2 }
 0x1a5   : > { %p1138_p5 = pnand %p1865_p7, %p1581_p12 }
 0x1a7   : > { %p1139_p2 = pneg %p1138_p5 }
 0x1a9   : > { %s801_s19 = sand.u32 1, %s1863_s4  }
 0x1aa   : > { %s802_s24 = scalar_lea.sflag [#allocation4], %s801_s19 }
 0x1ab   : > { %1452 = dma.done.wait (%p1139_p2), %s802_s24, 512  }
 0x1ac   : > { %1454 = vsyncadd (%p1139_p2), %s802_s24, 4294966784  ;;  %s812_s11 = scalar_lea.sflag [#allocation13], %s801_s19 }
 0x1ad   : > { %1456 = dma.done.wait (%p1139_p2), %s812_s11, 512  }
 0x1ae   : > { %1458 = vsyncadd (%p1139_p2), %s812_s11, 4294966784  ;;  %s1866_s30 = sld [smem:[#allocation20_spill]]  ;;  %s1868_s27 = smov %s1465_s28 }
 0x1af   : > { %s1867_s26 = sld [smem:[#allocation21_spill]]  ;;  %s1869_s28 = smov %s1469_s29 }
 0x1b4   : > { %p24_p11 = scmp.ge.s32.totalorder %s1866_s30, 4  }
 0x1b5   : > { %s1870_s29 = smov %s1867_s26 }
 0x1b6   :  { %26 = sbr.rel (!%p24_p11) target bundleno = 13 (0xd), region = 150 }
 0x1bb   :  { %818 = vsyncpa [#allocation3], 1 }
 0x1bc   :  { %820 = vsyncpa [#allocation3 + $0x1], 1 }
 0x1bd   :  { %821 = vsyncpa [#allocation6], 1 }
 0x1be   :  { %822 = vsyncpa [#allocation4], 1 }
 0x1bf   :  { %824 = vsyncpa [#allocation4 + $0x1], 1 }
 0x1c0   :  { %825 = vsyncpa [#allocation13], 1 }
 0x1c1   :  { %827 = vsyncpa [#allocation13 + $0x1], 1 }

</bundles_post_ra>
